<compile_context>
chip_gen: v5e
topology: v5e:2x2
jax: 0.10.0
libtpu: 0.0.40
codegen_flags: <defaults>
</compile_context>

<pallas_src>
import functools

import jax
import jax.numpy as jnp
from jax.experimental import pallas as pl
from jax.experimental.pallas import tpu as pltpu

IN_DIM = 4
HIDDEN = 50
OUT_DIM = 2

KP = 8            # padded contraction dim: 4 features + 1 ones row -> 8 sublanes
HP = 64           # padded hidden dim: 50 -> 64 (multiple of 8)
OUT_PAD = 8       # padded output rows: 2 -> 8 (full-sublane stores)
ONES_ROW = IN_DIM # row of xT that holds the constant 1.0 (layer-1 bias)
HID_ONES = HIDDEN # hidden unit that carries 1.0 through ReLU (layer-2 bias)

# VMEM budget per grid step ~ (2*32 + 2*32 + 256) B * tile_b ~= 384 B * tile_b
# (double-buffered x/out blocks + f32 h intermediate). 16384 -> ~6 MiB, safe on
# v5e (16 MiB scoped default), v6e (32 MiB) and v7x (32 MiB of 64 MiB physical).
MAX_TILE_B = 16384


def _mlp_kernel(x_ref, w1_ref, w2_ref, o_ref):
    # x_ref : (KP, TB)      features on sublanes, batch on lanes
    # w1_ref: (HP, KP)      rows j<50 = [W1[:,j], b1[j], 0,0,0]; row 50 = bias carrier
    # w2_ref: (OUT_PAD, HP) rows 0..1 = [W2[:,j] | b2]; rows 2..7 zero
    h = jnp.dot(w1_ref[...], x_ref[...], preferred_element_type=jnp.float32)
    h = jnp.maximum(h, 0.0)
    o_ref[...] = jnp.dot(w2_ref[...], h,
                         preferred_element_type=jnp.float32).astype(o_ref.dtype)


def pack_params(w1, b1, w2, b2):
    """Fold biases into zero-padded, transposed weight matrices.

    w1: (4, 50), b1: (50,), w2: (50, 2), b2: (2,)   (x @ w1 + b1 layout)
    Returns w1aug (HP, KP) and w2pad (OUT_PAD, HP).
    """
    w1aug = jnp.zeros((HP, KP), jnp.float32)
    w1aug = w1aug.at[:HIDDEN, :IN_DIM].set(w1.T)       # (50, 4)
    w1aug = w1aug.at[:HIDDEN, ONES_ROW].set(b1)        # bias column
    w1aug = w1aug.at[HID_ONES, ONES_ROW].set(1.0)      # h[50] = 1, ReLU(1) = 1
    w2pad = jnp.zeros((OUT_PAD, HP), jnp.float32)
    w2pad = w2pad.at[:OUT_DIM, :HIDDEN].set(w2.T)      # (2, 50)
    w2pad = w2pad.at[:OUT_DIM, HID_ONES].set(b2)       # bias via ones-carrying unit
    return w1aug, w2pad


@functools.lru_cache(maxsize=1)
def _cores_per_chip():
    """2 TensorCores on v7x-class chips, 1 on v5e/v6e."""
    try:
        kind = jax.devices()[0].device_kind.lower()
    except Exception:
        return 1
    return 2 if "7" in kind else 1


def _round_up(a, m):
    return ((a + m - 1) // m) * m


def _choose_tiling(batch, n_cores):
    """Pick (padded_batch, tile_b): single block when small, split for 2 TCs."""
    bp = _round_up(max(batch, 1), 128)                 # lane-dense padding
    if n_cores >= 2 and bp >= 256:
        tile = min(MAX_TILE_B, _round_up(pl.cdiv(bp, 2), 128))  # keep grid >= 2
    else:
        tile = min(MAX_TILE_B, bp)                     # single mega-block
    bp = _round_up(bp, tile)
    return bp, tile


def forward_packed(x_t, w1aug, w2pad, *, tile_b):
    """Lane-major forward. x_t: (KP, bp) with ones row set, bp % tile_b == 0.

    Returns (OUT_PAD, bp); rows 0:2 are the Q-values, batch on lanes. Use this
    directly (under your own jit) to keep activations in the packed layout
    across repeated calls and skip the wrapper transposes.
    """
    bp = x_t.shape[1]
    grid = (bp // tile_b,)
    return pl.pallas_call(
        _mlp_kernel,
        out_shape=jax.ShapeDtypeStruct((OUT_PAD, bp), jnp.float32),
        grid=grid,
        in_specs=[
            pl.BlockSpec((KP, tile_b), lambda i: (0, i)),     # stream x tiles
            pl.BlockSpec((HP, KP), lambda i: (0, 0)),         # VMEM-resident
            pl.BlockSpec((OUT_PAD, HP), lambda i: (0, 0)),    # VMEM-resident
        ],
        out_specs=pl.BlockSpec((OUT_PAD, tile_b), lambda i: (0, i)),
        compiler_params=pltpu.CompilerParams(
            dimension_semantics=("parallel",),                # shard batch over TCs
        ),
    )(x_t, w1aug, w2pad)


@functools.partial(jax.jit, static_argnames=("operand_dtype",))
def net_forward(x, w1aug, w2pad, operand_dtype=jnp.float32):
    """Forward pass. x: (B, 4) -> (B, 2) float32.

    operand_dtype=jnp.bfloat16 halves input HBM traffic (matmuls still
    accumulate in f32) but is no longer bit-exact vs. the f32 reference.
    """
    B = x.shape[0]
    bp, tile_b = _choose_tiling(B, _cores_per_chip())

    # Transposed, bias-augmented input: (KP, bp), batch on lanes (fused under jit).
    x_t = jnp.zeros((KP, bp), jnp.float32)
    x_t = x_t.at[:IN_DIM, :B].set(x.astype(jnp.float32).T)
    x_t = x_t.at[ONES_ROW, :].set(1.0)

    out_t = forward_packed(
        x_t.astype(operand_dtype),
        w1aug.astype(operand_dtype),
        w2pad,
        tile_b=tile_b,
    )
    return out_t[:OUT_DIM, :B].T   # back to PyTorch (B, 2) layout


def init_params(key):
    """Deterministic init matching nn.Linear defaults (stored as (in, out))."""
    k1, k2, k3, k4 = jax.random.split(key, 4)
    bound1 = 1.0 / jnp.sqrt(4.0)
    bound2 = 1.0 / jnp.sqrt(50.0)
    w1 = jax.random.uniform(k1, (IN_DIM, HIDDEN), jnp.float32, -bound1, bound1)
    b1 = jax.random.uniform(k2, (HIDDEN,), jnp.float32, -bound1, bound1)
    w2 = jax.random.uniform(k3, (HIDDEN, OUT_DIM), jnp.float32, -bound2, bound2)
    b2 = jax.random.uniform(k4, (OUT_DIM,), jnp.float32, -bound2, bound2)
    return w1, b1, w2, b2


if __name__ == "__main__":
    key = jax.random.PRNGKey(0)
    pkey, xkey = jax.random.split(key)
    w1, b1, w2, b2 = init_params(pkey)
    w1aug, w2pad = pack_params(w1, b1, w2, b2)

    # Batch of CartPole observations; single-block grid on v5e/v6e, 2 blocks on v7x.
    batch = 1024
    x = jax.random.normal(xkey, (batch, IN_DIM), jnp.float32)

    out = jax.block_until_ready(net_forward(x, w1aug, w2pad))
    ref = jnp.maximum(x @ w1 + b1[None, :], 0.0) @ w2 + b2[None, :]
    assert out.shape == (batch, OUT_DIM)
    assert jnp.allclose(out, ref, atol=1e-5, rtol=1e-5)

    # Small, non-128-multiple batch exercises the padding path.
    x_small = jax.random.normal(jax.random.PRNGKey(1), (8, IN_DIM), jnp.float32)
    out_small = jax.block_until_ready(net_forward(x_small, w1aug, w2pad))
    ref_small = jnp.maximum(x_small @ w1 + b1[None, :], 0.0) @ w2 + b2[None, :]
    assert out_small.shape == (8, OUT_DIM)
    assert jnp.allclose(out_small, ref_small, atol=1e-5, rtol=1e-5)

    print("KERNEL_OK")
</pallas_src>

<mosaic_0001>
module attributes {stable_mosaic.version = 11 : i64} {
  func.func @_mlp_kernel(%arg0: i32, %arg1: memref<8x1024xf32, #tpu.memory_space<vmem>>, %arg2: memref<64x8xf32, #tpu.memory_space<vmem>>, %arg3: memref<8x64xf32, #tpu.memory_space<vmem>>, %arg4: memref<8x1024xf32, #tpu.memory_space<vmem>>) attributes {dimension_semantics = [#tpu.dimension_semantics<parallel>], iteration_bounds = array<i64: 1>, scalar_prefetch = 0 : i64, scratch_operands = 0 : i64, tpu.core_type = #tpu.core_type<tc>, window_params = [{transform_indices = @transform_0, window_bounds = array<i64: 8, 1024>}, {pipeline_mode = #tpu.pipeline_mode<synchronous>, transform_indices = @transform_1, window_bounds = array<i64: 64, 8>}, {pipeline_mode = #tpu.pipeline_mode<synchronous>, transform_indices = @transform_2, window_bounds = array<i64: 8, 64>}, {transform_indices = @transform_3, window_bounds = array<i64: 8, 1024>}]} {
    %c0 = arith.constant 0 : index
    %c0_0 = arith.constant 0 : index
    %0 = vector.load %arg2[%c0, %c0_0] : memref<64x8xf32, #tpu.memory_space<vmem>>, vector<64x8xf32>
    %c0_1 = arith.constant 0 : index
    %c0_2 = arith.constant 0 : index
    %1 = vector.load %arg1[%c0_1, %c0_2] : memref<8x1024xf32, #tpu.memory_space<vmem>>, vector<8x1024xf32>
    %cst = arith.constant dense<0.000000e+00> : vector<64x1024xf32>
    %2 = tpu.matmul %0, %1, %cst {dimension_numbers = #tpu.dot_dimension_numbers<[1], [0], [0], [1], [0, 0, 1, 1], [], []>} : vector<64x8xf32>, vector<8x1024xf32>, vector<64x1024xf32> -> vector<64x1024xf32>
    %cst_3 = arith.constant 0.000000e+00 : f32
    %3 = vector.broadcast %cst_3 : f32 to vector<64x1024xf32>
    %4 = arith.maximumf %2, %3 : vector<64x1024xf32>
    %c0_4 = arith.constant 0 : index
    %c0_5 = arith.constant 0 : index
    %5 = vector.load %arg3[%c0_4, %c0_5] : memref<8x64xf32, #tpu.memory_space<vmem>>, vector<8x64xf32>
    %cst_6 = arith.constant dense<0.000000e+00> : vector<8x1024xf32>
    %6 = tpu.matmul %5, %4, %cst_6 {dimension_numbers = #tpu.dot_dimension_numbers<[1], [0], [0], [1], [0, 0, 1, 1], [], []>} : vector<8x64xf32>, vector<64x1024xf32>, vector<8x1024xf32> -> vector<8x1024xf32>
    %c0_7 = arith.constant 0 : index
    %c0_8 = arith.constant 0 : index
    %7 = vector.load %arg4[%c0_7, %c0_8] : memref<8x1024xf32, #tpu.memory_space<vmem>>, vector<8x1024xf32>
    tpu.vector_store %arg4[%c0_7, %c0_8], %6 {strides = array<i32>} : memref<8x1024xf32, #tpu.memory_space<vmem>>, vector<8x1024xf32>,
    return
  }
  func.func @transform_0(%arg0: i32) -> (i32, i32) {
    %c0_i32 = arith.constant 0 : i32
    %c0_i32_0 = arith.constant 0 : i32
    return %c0_i32, %arg0 : i32, i32
  }
  func.func @transform_1(%arg0: i32) -> (i32, i32) {
    %c0_i32 = arith.constant 0 : i32
    %c0_i32_0 = arith.constant 0 : i32
    %c0_i32_1 = arith.constant 0 : i32
    return %c0_i32, %c0_i32_0 : i32, i32
  }
  func.func @transform_2(%arg0: i32) -> (i32, i32) {
    %c0_i32 = arith.constant 0 : i32
    %c0_i32_0 = arith.constant 0 : i32
    %c0_i32_1 = arith.constant 0 : i32
    return %c0_i32, %c0_i32_0 : i32, i32
  }
  func.func @transform_3(%arg0: i32) -> (i32, i32) {
    %c0_i32 = arith.constant 0 : i32
    %c0_i32_0 = arith.constant 0 : i32
    return %c0_i32, %arg0 : i32, i32
  }
}

</mosaic_0001>

<bundles_post_ra>
// kernel: net_forward.1
= control target key start
LH: loop header
LB: loop body
LE: loop exit
PB: predicated region body
PF: predicated region fallthrough
CT: control target
= control target key end

     0   :  { %vm30_vm0 = vcmask 64512   ;;  %vm448_vm1 = vcmask 523264   ;;  %s963_s0 = inlined_call_operand.vmem [shape: f32[8,1024], index: 0, kind: input, shape index: {}]   ;;  %s964_s1 = inlined_call_operand.vmem [shape: f32[64,8], index: 1, kind: input, shape index: {}]   ;;  %s965_s2 = inlined_call_operand.vmem [shape: f32[8,64], index: 2, kind: input, shape index: {}]   ;;  %s966_s3 = inlined_call_operand.vmem [shape: f32[8,1024], index: 3, kind: output, shape index: {}]  }
   0x1   :  { %v22_v0 = vld [vmem:[%s963_s0] sm:$0xff]  ;;  %v23_v1 = vld [vmem:[%s963_s0 + $0x8] sm:$0xff]  ;;  %v24_v2 = vld [vmem:[%s963_s0 + $0x10] sm:$0xff] }
   0x2   :  { %70 = vmatpush.msra.mxu0 %v22_v0  ;;  %111 = vmatpush.msra.mxu1 %v23_v1  ;;  %v25_v3 = vld [vmem:[%s963_s0 + $0x18] sm:$0xff]  ;;  %v14_v4 = vld [vmem:[%s964_s1] sm:$0xff]  ;;  %v28_v5 = vld [vmem:[%s963_s0 + $0x30] sm:$0xff] }
   0x3   :  { %152 = vmatpush.msra.mxu2 %v24_v2  ;;  %193 = vmatpush.msra.mxu3 %v25_v3  ;;  %v29_v6 = vld [vmem:[%s963_s0 + $0x38] sm:$0xff]  ;;  %v26_v7 = vld [vmem:[%s963_s0 + $0x20] sm:$0xff]  ;;  %v27_v8 = vld [vmem:[%s963_s0 + $0x28] sm:$0xff] }
   0x4   :  { %624 = vmatmul.msk.f32.vlgmr.msra.gmra.mxu0 %vm30_vm0, %v14_v4  ;;  %632 = vmatmul.msk.f32.vlgmr.msra.gmra.mxu1 %vm30_vm0, %v14_v4  ;;  %v15_v9 = vld [vmem:[%s964_s1 + $0x8] sm:$0xff]  ;;  %v16_v10 = vld [vmem:[%s964_s1 + $0x10] sm:$0xff]  ;;  %v17_v11 = vld [vmem:[%s964_s1 + $0x18] sm:$0xff] }
   0x5   :  { %640 = vmatmul.msk.f32.vlgmr.msra.gmra.mxu2 %vm30_vm0, %v14_v4  ;;  %648 = vmatmul.msk.f32.vlgmr.msra.gmra.mxu3 %vm30_vm0, %v14_v4  ;;  %v18_v12 = vld [vmem:[%s964_s1 + $0x20] sm:$0xff]  ;;  %v19_v13 = vld [vmem:[%s964_s1 + $0x28] sm:$0xff]  ;;  %v20_v14 = vld [vmem:[%s964_s1 + $0x30] sm:$0xff] }
   0x6   :  { %316 = vmatpush.msrb.mxu2 %v28_v5  ;;  %357 = vmatpush.msrb.mxu3 %v29_v6  ;;  %v21_v15 = vld [vmem:[%s964_s1 + $0x38] sm:$0xff] }
   0x7   :  { %234 = vmatpush.msrb.mxu0 %v26_v7  ;;  %275 = vmatpush.msrb.mxu1 %v27_v8 }
   0xc   :  { %625 = vmatmul.msk.f32.gmra.mxu0 %vm30_vm0, %v15_v9  ;;  %633 = vmatmul.msk.f32.gmra.mxu1 %vm30_vm0, %v15_v9 }
   0xd   :  { %641 = vmatmul.msk.f32.gmra.mxu2 %vm30_vm0, %v15_v9  ;;  %649 = vmatmul.msk.f32.gmra.mxu3 %vm30_vm0, %v15_v9 }
  0x14   :  { %626 = vmatmul.msk.f32.gmra.mxu0 %vm30_vm0, %v16_v10  ;;  %634 = vmatmul.msk.f32.gmra.mxu1 %vm30_vm0, %v16_v10 }
  0x15   :  { %642 = vmatmul.msk.f32.gmra.mxu2 %vm30_vm0, %v16_v10  ;;  %650 = vmatmul.msk.f32.gmra.mxu3 %vm30_vm0, %v16_v10 }
  0x1c   :  { %627 = vmatmul.msk.f32.gmra.mxu0 %vm30_vm0, %v17_v11  ;;  %635 = vmatmul.msk.f32.gmra.mxu1 %vm30_vm0, %v17_v11 }
  0x1d   :  { %643 = vmatmul.msk.f32.gmra.mxu2 %vm30_vm0, %v17_v11  ;;  %651 = vmatmul.msk.f32.gmra.mxu3 %vm30_vm0, %v17_v11 }
  0x24   :  { %628 = vmatmul.msk.f32.gmra.mxu0 %vm30_vm0, %v18_v12  ;;  %636 = vmatmul.msk.f32.gmra.mxu1 %vm30_vm0, %v18_v12 }
  0x25   :  { %644 = vmatmul.msk.f32.gmra.mxu2 %vm30_vm0, %v18_v12  ;;  %652 = vmatmul.msk.f32.gmra.mxu3 %vm30_vm0, %v18_v12 }
  0x2c   :  { %629 = vmatmul.msk.f32.gmra.mxu0 %vm30_vm0, %v19_v13  ;;  %637 = vmatmul.msk.f32.gmra.mxu1 %vm30_vm0, %v19_v13 }
  0x2d   :  { %645 = vmatmul.msk.f32.gmra.mxu2 %vm30_vm0, %v19_v13  ;;  %653 = vmatmul.msk.f32.gmra.mxu3 %vm30_vm0, %v19_v13 }
  0x34   :  { %630 = vmatmul.msk.f32.gmra.mxu0 %vm30_vm0, %v20_v14  ;;  %638 = vmatmul.msk.f32.gmra.mxu1 %vm30_vm0, %v20_v14 }
  0x35   :  { %646 = vmatmul.msk.f32.gmra.mxu2 %vm30_vm0, %v20_v14  ;;  %654 = vmatmul.msk.f32.gmra.mxu3 %vm30_vm0, %v20_v14 }
  0x3c   :  { %631 = vmatmul.msk.f32.gmra.mxu0 %vm30_vm0, %v21_v15  ;;  %639 = vmatmul.msk.f32.gmra.mxu1 %vm30_vm0, %v21_v15 }
  0x3d   :  { %647 = vmatmul.msk.f32.gmra.mxu2 %vm30_vm0, %v21_v15  ;;  %655 = vmatmul.msk.f32.gmra.mxu3 %vm30_vm0, %v21_v15 }
  0x44   :  { %656 = vmatmul.msk.f32.vlgmr.msrb.gmra.mxu0 %vm30_vm0, %v14_v4  ;;  %664 = vmatmul.msk.f32.vlgmr.msrb.gmra.mxu1 %vm30_vm0, %v14_v4 }
  0x45   :  { %672 = vmatmul.msk.f32.vlgmr.msrb.gmra.mxu2 %vm30_vm0, %v14_v4  ;;  %680 = vmatmul.msk.f32.vlgmr.msrb.gmra.mxu3 %vm30_vm0, %v14_v4 }
  0x4c   :  { %657 = vmatmul.msk.f32.gmra.mxu0 %vm30_vm0, %v15_v9  ;;  %665 = vmatmul.msk.f32.gmra.mxu1 %vm30_vm0, %v15_v9 }
  0x4d   :  { %673 = vmatmul.msk.f32.gmra.mxu2 %vm30_vm0, %v15_v9  ;;  %681 = vmatmul.msk.f32.gmra.mxu3 %vm30_vm0, %v15_v9 }
  0x54   :  { %658 = vmatmul.msk.f32.gmra.mxu0 %vm30_vm0, %v16_v10  ;;  %666 = vmatmul.msk.f32.gmra.mxu1 %vm30_vm0, %v16_v10 }
  0x55   :  { %674 = vmatmul.msk.f32.gmra.mxu2 %vm30_vm0, %v16_v10  ;;  %682 = vmatmul.msk.f32.gmra.mxu3 %vm30_vm0, %v16_v10 }
  0x5c   :  { %659 = vmatmul.msk.f32.gmra.mxu0 %vm30_vm0, %v17_v11  ;;  %667 = vmatmul.msk.f32.gmra.mxu1 %vm30_vm0, %v17_v11 }
  0x5d   :  { %675 = vmatmul.msk.f32.gmra.mxu2 %vm30_vm0, %v17_v11  ;;  %683 = vmatmul.msk.f32.gmra.mxu3 %vm30_vm0, %v17_v11 }
  0x64   :  { %660 = vmatmul.msk.f32.gmra.mxu0 %vm30_vm0, %v18_v12  ;;  %668 = vmatmul.msk.f32.gmra.mxu1 %vm30_vm0, %v18_v12 }
  0x65   :  { %676 = vmatmul.msk.f32.gmra.mxu2 %vm30_vm0, %v18_v12  ;;  %684 = vmatmul.msk.f32.gmra.mxu3 %vm30_vm0, %v18_v12 }
  0x6c   :  { %661 = vmatmul.msk.f32.gmra.mxu0 %vm30_vm0, %v19_v13  ;;  %669 = vmatmul.msk.f32.gmra.mxu1 %vm30_vm0, %v19_v13 }
  0x6d   :  { %677 = vmatmul.msk.f32.gmra.mxu2 %vm30_vm0, %v19_v13  ;;  %685 = vmatmul.msk.f32.gmra.mxu3 %vm30_vm0, %v19_v13 }
  0x74   :  { %662 = vmatmul.msk.f32.gmra.mxu0 %vm30_vm0, %v20_v14  ;;  %670 = vmatmul.msk.f32.gmra.mxu1 %vm30_vm0, %v20_v14 }
  0x75   :  { %678 = vmatmul.msk.f32.gmra.mxu2 %vm30_vm0, %v20_v14  ;;  %686 = vmatmul.msk.f32.gmra.mxu3 %vm30_vm0, %v20_v14 }
  0x7c   :  { %663 = vmatmul.msk.f32.gmra.mxu0 %vm30_vm0, %v21_v15  ;;  %671 = vmatmul.msk.f32.gmra.mxu1 %vm30_vm0, %v21_v15 }
  0x7d   :  { %679 = vmatmul.msk.f32.gmra.mxu2 %vm30_vm0, %v21_v15  ;;  %687 = vmatmul.msk.f32.gmra.mxu3 %vm30_vm0, %v21_v15 }
  0x81   :  { %v828_v16 = vpop.f32.mrf.mxu0  ;;  %v830_v17 = vpop.f32.mrf.mxu1 }
  0x82   :  { %v383_v8 = vmax.f32 %v828_v16, 0.0  ;;  %v384_v9 = vmax.f32 %v830_v17, 0.0 }
  0x88   :  { %v832_v18 = vpop.f32.mrf.mxu2  ;;  %v834_v19 = vpop.f32.mrf.mxu3 }
  0x89   :  { %v836_v20 = vpop.f32.mrf.mxu0  ;;  %v838_v21 = vpop.f32.mrf.mxu1 }
  0x8a   :  { %v391_v4 = vmax.f32 %v836_v20, 0.0  ;;  %v392_v5 = vmax.f32 %v838_v21, 0.0 }
  0x90   :  { %v840_v22 = vpop.f32.mrf.mxu2  ;;  %v842_v23 = vpop.f32.mrf.mxu3 }
  0x91   :  { %v78_v24 = vpop.f32.mrf.mxu0  ;;  %v119_v25 = vpop.f32.mrf.mxu1  ;;  %v393_v20 = vmax.f32 %v840_v22, 0.0  ;;  %v394_v21 = vmax.f32 %v842_v23, 0.0 }
  0x92   :  { %v399_v0 = vmax.f32 %v78_v24, 0.0  ;;  %v400_v1 = vmax.f32 %v119_v25, 0.0  ;;  %v385_v24 = vmax.f32 %v832_v18, 0.0  ;;  %v386_v25 = vmax.f32 %v834_v19, 0.0 }
  0x98   :  { %v844_v26 = vpop.f32.mrf.mxu2  ;;  %v846_v27 = vpop.f32.mrf.mxu3 }
  0x99   :  { %v81_v28 = vpop.f32.mrf.mxu0  ;;  %v122_v29 = vpop.f32.mrf.mxu1  ;;  %v401_v16 = vmax.f32 %v844_v26, 0.0  ;;  %v402_v17 = vmax.f32 %v846_v27, 0.0 }
  0x9a   :  { %v407_v60 = vmax.f32 %v81_v28, 0.0  ;;  %v408_v61 = vmax.f32 %v122_v29, 0.0 }
  0xa0   :  { %v848_v30 = vpop.f32.mrf.mxu2  ;;  %v850_v31 = vpop.f32.mrf.mxu3 }
  0xa1   :  { %v84_v32 = vpop.f32.mrf.mxu0  ;;  %v125_v33 = vpop.f32.mrf.mxu1  ;;  %v409_v12 = vmax.f32 %v848_v30, 0.0  ;;  %v410_v13 = vmax.f32 %v850_v31, 0.0 }
  0xa2   :  { %v415_v52 = vmax.f32 %v84_v32, 0.0  ;;  %v416_v53 = vmax.f32 %v125_v33, 0.0 }
  0xa8   :  { %v852_v34 = vpop.f32.mrf.mxu2  ;;  %v854_v35 = vpop.f32.mrf.mxu3 }
  0xa9   :  { %v87_v36 = vpop.f32.mrf.mxu0  ;;  %v128_v37 = vpop.f32.mrf.mxu1  ;;  %v417_v6 = vmax.f32 %v852_v34, 0.0  ;;  %v418_v7 = vmax.f32 %v854_v35, 0.0 }
  0xaa   :  { %v423_v50 = vmax.f32 %v87_v36, 0.0  ;;  %v424_v51 = vmax.f32 %v128_v37, 0.0 }
  0xb0   :  { %v169_v38 = vpop.f32.mrf.mxu2  ;;  %v210_v39 = vpop.f32.mrf.mxu3 }
  0xb1   :  { %v90_v40 = vpop.f32.mrf.mxu0  ;;  %v131_v41 = vpop.f32.mrf.mxu1  ;;  %v425_v2 = vmax.f32 %v169_v38, 0.0  ;;  %v426_v3 = vmax.f32 %v210_v39, 0.0  ;;  %v905_v38 = vld [vmem:[%s965_s2] sm:$0xff] }
  0xb2   :  { %v431_v46 = vmax.f32 %v90_v40, 0.0  ;;  %v432_v47 = vmax.f32 %v131_v41, 0.0 }
  0xb8   :  { %v172_v42 = vpop.f32.mrf.mxu2  ;;  %v213_v43 = vpop.f32.mrf.mxu3 }
  0xb9   :  { %v93_v44 = vpop.f32.mrf.mxu0  ;;  %v134_v45 = vpop.f32.mrf.mxu1  ;;  %v433_v62 = vmax.f32 %v172_v42, 0.0  ;;  %v434_v63 = vmax.f32 %v213_v43, 0.0 }
  0xba   :  { %v439_v48 = vmax.f32 %v93_v44, 0.0  ;;  %v440_v49 = vmax.f32 %v134_v45, 0.0 }
  0xbc   :  { %460 = vmatpush.msra.mxu0 %v439_v48  ;;  %480 = vmatpush.msra.mxu1 %v440_v49 }
  0xbe   :  { %461 = vmatpush.msra.mxu0 %v431_v46  ;;  %481 = vmatpush.msra.mxu1 %v432_v47 }
  0xc0   :  { %v175_v54 = vpop.f32.mrf.mxu2  ;;  %v216_v55 = vpop.f32.mrf.mxu3  ;;  %462 = vmatpush.msra.mxu0 %v423_v50  ;;  %482 = vmatpush.msra.mxu1 %v424_v51 }
  0xc1   :  { %v441_v56 = vmax.f32 %v175_v54, 0.0  ;;  %v442_v57 = vmax.f32 %v216_v55, 0.0  ;;  %v856_v58 = vpop.f32.mrf.mxu0  ;;  %v858_v59 = vpop.f32.mrf.mxu1 }
  0xc2   :  { %463 = vmatpush.msra.mxu0 %v415_v52  ;;  %483 = vmatpush.msra.mxu1 %v416_v53 }
  0xc3   :  { %500 = vmatpush.msra.mxu2 %v441_v56  ;;  %520 = vmatpush.msra.mxu3 %v442_v57 }
  0xc4   :  { %464 = vmatpush.msra.mxu0 %v407_v60  ;;  %484 = vmatpush.msra.mxu1 %v408_v61 }
  0xc5   :  { %501 = vmatpush.msra.mxu2 %v433_v62  ;;  %521 = vmatpush.msra.mxu3 %v434_v63 }
  0xc6   :  { %465 = vmatpush.msra.mxu0 %v399_v0  ;;  %485 = vmatpush.msra.mxu1 %v400_v1 }
  0xc7   :  { %502 = vmatpush.msra.mxu2 %v425_v2  ;;  %522 = vmatpush.msra.mxu3 %v426_v3 }
  0xc8   :  { %v866_v10 = vpop.f32.mrf.mxu2  ;;  %v868_v11 = vpop.f32.mrf.mxu3  ;;  %466 = vmatpush.msra.mxu0 %v391_v4  ;;  %486 = vmatpush.msra.mxu1 %v392_v5 }
  0xc9   :  { %503 = vmatpush.msra.mxu2 %v417_v6  ;;  %523 = vmatpush.msra.mxu3 %v418_v7  ;;  %v872_v14 = vpop.f32.mrf.mxu0  ;;  %v874_v15 = vpop.f32.mrf.mxu1 }
  0xca   :  { %467 = vmatpush.msra.mxu0 %v383_v8  ;;  %487 = vmatpush.msra.mxu1 %v384_v9  ;;  %v395_v5 = vmax.f32 %v872_v14, 0.0  ;;  %v396_v6 = vmax.f32 %v874_v15, 0.0  ;;  %v387_v9 = vmax.f32 %v856_v58, 0.0 }
  0xcb   :  { %504 = vmatpush.msra.mxu2 %v409_v12  ;;  %524 = vmatpush.msra.mxu3 %v410_v13  ;;  %v388_v12 = vmax.f32 %v858_v59, 0.0 }
  0xcc   :  { %688 = vmatmul.msk.f32.vlgmr.msra.gmra.mxu0 %vm448_vm1, %v905_v38  ;;  %689 = vmatmul.msk.f32.vlgmr.msra.gmra.mxu1 %vm448_vm1, %v905_v38 }
  0xcd   :  { %505 = vmatpush.msra.mxu2 %v401_v16  ;;  %525 = vmatpush.msra.mxu3 %v402_v17  ;;  %v389_v17 = vmax.f32 %v866_v10, 0.0 }
  0xcf   :  { %506 = vmatpush.msra.mxu2 %v393_v20  ;;  %526 = vmatpush.msra.mxu3 %v394_v21  ;;  %v390_v20 = vmax.f32 %v868_v11, 0.0 }
  0xd0   :  { %v882_v28 = vpop.f32.mrf.mxu2  ;;  %v884_v29 = vpop.f32.mrf.mxu3 }
  0xd1   :  { %507 = vmatpush.msra.mxu2 %v385_v24  ;;  %527 = vmatpush.msra.mxu3 %v386_v25  ;;  %v886_v26 = vpop.f32.mrf.mxu0  ;;  %v888_v27 = vpop.f32.mrf.mxu1  ;;  %v397_v58 = vmax.f32 %v882_v28, 0.0  ;;  %v398_v59 = vmax.f32 %v884_v29, 0.0 }
  0xd2   :  { %690 = vmatmul.msk.f32.vlgmr.msra.gmra.mxu2 %vm448_vm1, %v905_v38  ;;  %691 = vmatmul.msk.f32.vlgmr.msra.gmra.mxu3 %vm448_vm1, %v905_v38  ;;  %v403_v1 = vmax.f32 %v886_v26, 0.0  ;;  %v404_v2 = vmax.f32 %v888_v27, 0.0 }
  0xd8   :  { %v890_v22 = vpop.f32.mrf.mxu2  ;;  %v892_v23 = vpop.f32.mrf.mxu3 }
  0xd9   :  { %v245_v30 = vpop.f32.mrf.mxu0  ;;  %v286_v18 = vpop.f32.mrf.mxu1  ;;  %v405_v15 = vmax.f32 %v890_v22, 0.0  ;;  %v406_v16 = vmax.f32 %v892_v23, 0.0 }
  0xda   :  { %v411_v61 = vmax.f32 %v245_v30, 0.0  ;;  %v412_v62 = vmax.f32 %v286_v18, 0.0 }
  0xe0   :  { %v894_v31 = vpop.f32.mrf.mxu2  ;;  %v896_v19 = vpop.f32.mrf.mxu3 }
  0xe1   :  { %v248_v32 = vpop.f32.mrf.mxu0  ;;  %v289_v33 = vpop.f32.mrf.mxu1  ;;  %v413_v13 = vmax.f32 %v894_v31, 0.0  ;;  %v414_v14 = vmax.f32 %v896_v19, 0.0 }
  0xe2   :  { %v419_v53 = vmax.f32 %v248_v32, 0.0  ;;  %v420_v54 = vmax.f32 %v289_v33, 0.0 }
  0xe8   :  { %v898_v34 = vpop.f32.mrf.mxu2  ;;  %v900_v35 = vpop.f32.mrf.mxu3 }
  0xe9   :  { %v251_v36 = vpop.f32.mrf.mxu0  ;;  %v292_v37 = vpop.f32.mrf.mxu1  ;;  %v421_v7 = vmax.f32 %v898_v34, 0.0  ;;  %v422_v8 = vmax.f32 %v900_v35, 0.0 }
  0xea   :  { %v427_v51 = vmax.f32 %v251_v36, 0.0  ;;  %v428_v52 = vmax.f32 %v292_v37, 0.0 }
  0xf0   :  { %v333_v39 = vpop.f32.mrf.mxu2  ;;  %v374_v40 = vpop.f32.mrf.mxu3 }
  0xf1   :  { %v254_v41 = vpop.f32.mrf.mxu0  ;;  %v295_v42 = vpop.f32.mrf.mxu1  ;;  %v429_v3 = vmax.f32 %v333_v39, 0.0  ;;  %v430_v4 = vmax.f32 %v374_v40, 0.0 }
  0xf2   :  { %v435_v47 = vmax.f32 %v254_v41, 0.0  ;;  %v436_v48 = vmax.f32 %v295_v42, 0.0 }
  0xf8   :  { %v336_v43 = vpop.f32.mrf.mxu2  ;;  %v377_v44 = vpop.f32.mrf.mxu3 }
  0xf9   :  { %v257_v45 = vpop.f32.mrf.mxu0  ;;  %v298_v46 = vpop.f32.mrf.mxu1  ;;  %v437_v63 = vmax.f32 %v336_v43, 0.0  ;;  %v438_v0 = vmax.f32 %v377_v44, 0.0 }
  0xfa   :  { %v443_v49 = vmax.f32 %v257_v45, 0.0  ;;  %v444_v50 = vmax.f32 %v298_v46, 0.0 }
  0xfc   :  { %540 = vmatpush.msrb.mxu0 %v443_v49  ;;  %560 = vmatpush.msrb.mxu1 %v444_v50 }
  0xfe   :  { %541 = vmatpush.msrb.mxu0 %v435_v47  ;;  %561 = vmatpush.msrb.mxu1 %v436_v48 }
 0x100   :  { %v339_v55 = vpop.f32.mrf.mxu2  ;;  %v380_v56 = vpop.f32.mrf.mxu3  ;;  %542 = vmatpush.msrb.mxu0 %v427_v51  ;;  %562 = vmatpush.msrb.mxu1 %v428_v52 }
 0x101   :  { %v445_v57 = vmax.f32 %v339_v55, 0.0  ;;  %v446_v60 = vmax.f32 %v380_v56, 0.0 }
 0x102   :  { %543 = vmatpush.msrb.mxu0 %v419_v53  ;;  %563 = vmatpush.msrb.mxu1 %v420_v54 }
 0x103   :  { %580 = vmatpush.msrb.mxu2 %v445_v57  ;;  %600 = vmatpush.msrb.mxu3 %v446_v60 }
 0x104   :  { %544 = vmatpush.msrb.mxu0 %v411_v61  ;;  %564 = vmatpush.msrb.mxu1 %v412_v62 }
 0x105   :  { %581 = vmatpush.msrb.mxu2 %v437_v63  ;;  %601 = vmatpush.msrb.mxu3 %v438_v0 }
 0x106   :  { %545 = vmatpush.msrb.mxu0 %v403_v1  ;;  %565 = vmatpush.msrb.mxu1 %v404_v2 }
 0x107   :  { %582 = vmatpush.msrb.mxu2 %v429_v3  ;;  %602 = vmatpush.msrb.mxu3 %v430_v4 }
 0x108   :  { %546 = vmatpush.msrb.mxu0 %v395_v5  ;;  %566 = vmatpush.msrb.mxu1 %v396_v6 }
 0x109   :  { %583 = vmatpush.msrb.mxu2 %v421_v7  ;;  %603 = vmatpush.msrb.mxu3 %v422_v8 }
 0x10a   :  { %547 = vmatpush.msrb.mxu0 %v387_v9  ;;  %567 = vmatpush.msrb.mxu1 %v388_v12 }
 0x10b   :  { %584 = vmatpush.msrb.mxu2 %v413_v13  ;;  %604 = vmatpush.msrb.mxu3 %v414_v14 }
 0x10c   :  { %692 = vmatmul.msk.f32.vlgmr.msrb.gmra.mxu0 %vm448_vm1, %v905_v38  ;;  %693 = vmatmul.msk.f32.vlgmr.msrb.gmra.mxu1 %vm448_vm1, %v905_v38 }
 0x10d   :  { %585 = vmatpush.msrb.mxu2 %v405_v15  ;;  %605 = vmatpush.msrb.mxu3 %v406_v16 }
 0x10f   :  { %586 = vmatpush.msrb.mxu2 %v397_v58  ;;  %606 = vmatpush.msrb.mxu3 %v398_v59 }
 0x111   :  { %587 = vmatpush.msrb.mxu2 %v389_v17  ;;  %607 = vmatpush.msrb.mxu3 %v390_v20 }
 0x112   :  { %694 = vmatmul.msk.f32.vlgmr.msrb.gmra.mxu2 %vm448_vm1, %v905_v38  ;;  %695 = vmatmul.msk.f32.vlgmr.msrb.gmra.mxu3 %vm448_vm1, %v905_v38 }
 0x149   :  { %v469_v21 = vpop.f32.mrf.mxu0  ;;  %v489_v24 = vpop.f32.mrf.mxu1 }
 0x14a   :  { %612 = vst [vmem:[%s966_s3] sm:$0xff] %v469_v21 }
 0x14b   :  { %613 = vst [vmem:[%s966_s3 + $0x8] sm:$0xff] %v489_v24 }
 0x155   :  { %v509_v10 = vpop.f32.mrf.mxu2  ;;  %v529_v11 = vpop.f32.mrf.mxu3 }
 0x156   :  { %614 = vst [vmem:[%s966_s3 + $0x10] sm:$0xff] %v509_v10 }
 0x157   :  { %615 = vst [vmem:[%s966_s3 + $0x18] sm:$0xff] %v529_v11 }
 0x189   :  { %v549_v25 = vpop.f32.mrf.mxu0  ;;  %v569_v28 = vpop.f32.mrf.mxu1 }
 0x18a   :  { %616 = vst [vmem:[%s966_s3 + $0x20] sm:$0xff] %v549_v25 }
 0x18b   :  { %617 = vst [vmem:[%s966_s3 + $0x28] sm:$0xff] %v569_v28 }
 0x195   :  { %v589_v29 = vpop.f32.mrf.mxu2  ;;  %v609_v26 = vpop.f32.mrf.mxu3 }
 0x196   :  { %618 = vst [vmem:[%s966_s3 + $0x30] sm:$0xff] %v589_v29 }
 0x197   :  { %619 = vst [vmem:[%s966_s3 + $0x38] sm:$0xff] %v609_v26 }

</bundles_post_ra>
